<compile_context>
chip_gen: v7x
topology: tpu7x:2x2x1
jax: 0.10.0
libtpu: 0.0.40
codegen_flags: <defaults>
</compile_context>

<pallas_src>
import functools

import jax
import jax.numpy as jnp
from jax.experimental import pallas as pl
from jax.experimental.pallas import tpu as pltpu


def _joint_sinh_attn_kernel(q_ref, k_ref, v_ref, m_ref, o_ref, *, head_dim):
    # q_ref/k_ref/v_ref: (1, H, S, D), m_ref: (1, 1, S), o_ref: (1, H, S, D)
    q = q_ref[0]                      # (H, S, D) f32
    k = k_ref[0]                      # (H, S, D) f32
    v = v_ref[0]                      # (H, S, D) f32
    m = m_ref[0]                      # (1, S)    f32, strictly 0/1

    scale = head_dim ** (-0.5)

    # Batched QK^T contracting D on K's native (S, D) layout (no .T / XLU
    # transpose); f32 MXU accumulation. bf16 input cast is possible on
    # v6e/v7x for ~3x MXU throughput but is skipped to stay within 1e-4.
    s = jnp.einsum("hqd,hkd->hqk", q, k,
                   preferred_element_type=jnp.float32)        # (H, S, S)

    # Fold the 1/sqrt(D) scale into the 0/1 column mask (single elementwise
    # pass). Masking score columns == masking K rows because the mask is
    # exactly 0/1 (wrapper enforces this invariant).
    s = s * (m * scale)[None, :, :]

    # sinh(relu(x)) with one exp: for x >= 0, sinh(x) = (e - 1/e) / 2.
    x = jnp.maximum(s, 0.0)
    e = jnp.exp(x)
    p = 0.5 * (e - 1.0 / e)

    denom = jnp.maximum(jnp.sum(p, axis=-1, keepdims=True), 1e-6)  # clamp_min
    p = p / denom

    out = jnp.einsum("hqk,hkd->hqd", p, v,
                     preferred_element_type=jnp.float32)      # (H, S, D)
    o_ref[0] = out.astype(o_ref.dtype)
    # TODO(synk): if S ever scales to production lengths, stream K/V in column
    # blocks with running numerator/denominator instead of the full (S,S) tile.


def joint_sinh_linear_attention(Q, K, V, mask):
    """Pallas TPU implementation of JointSinhLinearAttention.forward.

    Q, K, V: [B, H, S, D] float32
    mask:    [B, S] (any numeric/bool; nonzero = keep)
    returns: [B, H, S, D] float32
    """
    B, H, S, D = Q.shape

    # 0/1 float mask, one copy per batch element: (B, 1, S).
    m = (mask != 0).astype(jnp.float32).reshape(B, 1, S)

    kernel = functools.partial(_joint_sinh_attn_kernel, head_dim=D)

    cost = pl.CostEstimate(
        flops=4 * B * H * S * S * D,              # QK^T + PV matmuls
        transcendentals=B * H * S * S,            # one exp per score
        bytes_accessed=4 * B * H * S * D * 4 + B * S * 4,
    )

    qkv_spec = pl.BlockSpec((1, H, S, D), lambda b: (b, 0, 0, 0))

    out = pl.pallas_call(
        kernel,
        out_shape=jax.ShapeDtypeStruct((B, H, S, D), Q.dtype),
        grid_spec=pltpu.PrefetchScalarGridSpec(
            num_scalar_prefetch=0,
            grid=(B,),
            in_specs=[
                qkv_spec,                                       # Q
                qkv_spec,                                       # K
                qkv_spec,                                       # V
                pl.BlockSpec((1, 1, S), lambda b: (b, 0, 0)),   # mask
            ],
            out_specs=qkv_spec,
        ),
        compiler_params=pltpu.CompilerParams(
            dimension_semantics=("parallel",)),
        cost_estimate=cost,
    )(Q, K, V, m)

    return out


def _reference(Q, K, V, mask):
    # Pure-JAX reference mirroring the PyTorch forward exactly.
    m = (mask != 0)
    Km = jnp.where(m[:, None, :, None], K, 0.0)
    Qs = Q * Q.shape[-1] ** (-0.5)
    dot = jnp.einsum("bhqd,bhkd->bhqk", Qs, Km)
    dot = jnp.sinh(jnp.maximum(dot, 0.0))
    denom = jnp.maximum(jnp.sum(dot, axis=-1, keepdims=True), 1e-6)
    dot = dot / denom
    return jnp.einsum("bhqk,bhkd->bhqd", dot, V)


if __name__ == "__main__":
    # config: num_head=2, head_dim=32, max_seq_len=16
    B, H, S, D = 2, 2, 16, 32
    key = jax.random.PRNGKey(0)
    kq, kk, kv = jax.random.split(key, 3)
    Q = jax.random.normal(kq, (B, H, S, D), dtype=jnp.float32)
    K = jax.random.normal(kk, (B, H, S, D), dtype=jnp.float32)
    V = jax.random.normal(kv, (B, H, S, D), dtype=jnp.float32)
    # deterministic mask: last quarter of positions of batch 1 masked out
    mask = jnp.ones((B, S), dtype=jnp.float32)
    mask = mask.at[1, 3 * S // 4:].set(0.0)

    out = jax.block_until_ready(joint_sinh_linear_attention(Q, K, V, mask))

    ref = _reference(Q, K, V, mask)
    assert out.shape == (B, H, S, D)
    assert jnp.allclose(out, ref, atol=1e-4, rtol=1e-4), "mismatch vs reference"
    print("KERNEL_OK")
</pallas_src>

<mosaic_0001>
module attributes {stable_mosaic.version = 11 : i64} {
  func.func @_joint_sinh_attn_kernel(%arg0: i32, %arg1: memref<1x2x16x32xf32, #tpu.memory_space<vmem>>, %arg2: memref<1x2x16x32xf32, #tpu.memory_space<vmem>>, %arg3: memref<1x2x16x32xf32, #tpu.memory_space<vmem>>, %arg4: memref<1x1x16xf32, #tpu.memory_space<vmem>>, %arg5: memref<1x2x16x32xf32, #tpu.memory_space<vmem>>) attributes {dimension_semantics = [#tpu.dimension_semantics<parallel>], iteration_bounds = array<i64: 2>, scalar_prefetch = 0 : i64, scratch_operands = 0 : i64, tpu.core_type = #tpu.core_type<tc>, window_params = [{transform_indices = @transform_0, window_bounds = array<i64: 1, 2, 16, 32>}, {transform_indices = @transform_1, window_bounds = array<i64: 1, 2, 16, 32>}, {transform_indices = @transform_2, window_bounds = array<i64: 1, 2, 16, 32>}, {transform_indices = @transform_3, window_bounds = array<i64: 1, 1, 16>}, {transform_indices = @transform_4, window_bounds = array<i64: 1, 2, 16, 32>}]} {
    %c0 = arith.constant 0 : index
    %c0_0 = arith.constant 0 : index
    %c0_1 = arith.constant 0 : index
    %c0_2 = arith.constant 0 : index
    %0 = vector.load %arg1[%c0, %c0_0, %c0_1, %c0_2] : memref<1x2x16x32xf32, #tpu.memory_space<vmem>>, vector<1x2x16x32xf32>
    %1 = vector.shape_cast %0 : vector<1x2x16x32xf32> to vector<2x16x32xf32>
    %c0_3 = arith.constant 0 : index
    %c0_4 = arith.constant 0 : index
    %c0_5 = arith.constant 0 : index
    %c0_6 = arith.constant 0 : index
    %2 = vector.load %arg2[%c0_3, %c0_4, %c0_5, %c0_6] : memref<1x2x16x32xf32, #tpu.memory_space<vmem>>, vector<1x2x16x32xf32>
    %3 = vector.shape_cast %2 : vector<1x2x16x32xf32> to vector<2x16x32xf32>
    %c0_7 = arith.constant 0 : index
    %c0_8 = arith.constant 0 : index
    %c0_9 = arith.constant 0 : index
    %c0_10 = arith.constant 0 : index
    %4 = vector.load %arg3[%c0_7, %c0_8, %c0_9, %c0_10] : memref<1x2x16x32xf32, #tpu.memory_space<vmem>>, vector<1x2x16x32xf32>
    %5 = vector.shape_cast %4 : vector<1x2x16x32xf32> to vector<2x16x32xf32>
    %c0_11 = arith.constant 0 : index
    %c0_12 = arith.constant 0 : index
    %c0_13 = arith.constant 0 : index
    %6 = vector.load %arg4[%c0_11, %c0_12, %c0_13] : memref<1x1x16xf32, #tpu.memory_space<vmem>>, vector<1x1x16xf32>
    %7 = vector.shape_cast %6 : vector<1x1x16xf32> to vector<1x16xf32>
    "tpu.trace_start"() <{level = 10 : i32, message = "hqd,hkd->hqk"}> : () -> ()
    %cst = arith.constant dense<0.000000e+00> : vector<2x16x16xf32>
    %8 = tpu.matmul %1, %3, %cst {dimension_numbers = #tpu.dot_dimension_numbers<[2], [2], [1], [1], [0, 0, 0, 1, 1, 1], [0], [0]>} : vector<2x16x32xf32>, vector<2x16x32xf32>, vector<2x16x16xf32> -> vector<2x16x16xf32>
    "tpu.trace_stop"() : () -> ()
    %cst_14 = arith.constant 0.176776692 : f32
    %9 = vector.broadcast %cst_14 : f32 to vector<1x16xf32>
    %10 = arith.mulf %7, %9 : vector<1x16xf32>
    %11 = vector.shape_cast %10 : vector<1x16xf32> to vector<1x1x16xf32>
    %12 = vector.broadcast %11 : vector<1x1x16xf32> to vector<2x16x16xf32>
    %13 = arith.mulf %8, %12 : vector<2x16x16xf32>
    %cst_15 = arith.constant 0.000000e+00 : f32
    %14 = vector.broadcast %cst_15 : f32 to vector<2x16x16xf32>
    %15 = arith.maximumf %13, %14 : vector<2x16x16xf32>
    %16 = math.exp %15 : vector<2x16x16xf32>
    %cst_16 = arith.constant 1.000000e+00 : f32
    %17 = vector.broadcast %cst_16 : f32 to vector<2x16x16xf32>
    %18 = arith.divf %17, %16 : vector<2x16x16xf32>
    %19 = arith.subf %16, %18 : vector<2x16x16xf32>
    %cst_17 = arith.constant 5.000000e-01 : f32
    %20 = vector.broadcast %cst_17 : f32 to vector<2x16x16xf32>
    %21 = arith.mulf %20, %19 : vector<2x16x16xf32>
    %cst_18 = arith.constant dense<0.000000e+00> : vector<2x16xf32>
    %22 = vector.multi_reduction <add>, %21, %cst_18 [2] : vector<2x16x16xf32> to vector<2x16xf32>
    %23 = vector.shape_cast %22 : vector<2x16xf32> to vector<2x16x1xf32>
    %cst_19 = arith.constant 9.99999997E-7 : f32
    %24 = vector.broadcast %cst_19 : f32 to vector<2x16x1xf32>
    %25 = arith.maximumf %23, %24 : vector<2x16x1xf32>
    %26 = vector.broadcast %25 : vector<2x16x1xf32> to vector<2x16x16xf32>
    %27 = arith.divf %21, %26 : vector<2x16x16xf32>
    "tpu.trace_start"() <{level = 10 : i32, message = "hqk,hkd->hqd"}> : () -> ()
    %cst_20 = arith.constant dense<0.000000e+00> : vector<2x16x32xf32>
    %28 = tpu.matmul %27, %5, %cst_20 {dimension_numbers = #tpu.dot_dimension_numbers<[2], [1], [1], [2], [0, 0, 0, 1, 1, 2], [0], [0]>} : vector<2x16x16xf32>, vector<2x16x32xf32>, vector<2x16x32xf32> -> vector<2x16x32xf32>
    "tpu.trace_stop"() : () -> ()
    %c0_21 = arith.constant 0 : index
    %c0_22 = arith.constant 0 : index
    %c0_23 = arith.constant 0 : index
    %c0_24 = arith.constant 0 : index
    %29 = vector.load %arg5[%c0_21, %c0_22, %c0_23, %c0_24] : memref<1x2x16x32xf32, #tpu.memory_space<vmem>>, vector<1x2x16x32xf32>
    %30 = vector.shape_cast %29 : vector<1x2x16x32xf32> to vector<2x16x32xf32>
    %31 = vector.shape_cast %28 : vector<2x16x32xf32> to vector<1x2x16x32xf32>
    tpu.vector_store %arg5[%c0_21, %c0_22, %c0_23, %c0_24], %31 {strides = array<i32>} : memref<1x2x16x32xf32, #tpu.memory_space<vmem>>, vector<1x2x16x32xf32>,
    return
  }
  func.func @transform_0(%arg0: i32) -> (i32, i32, i32, i32) {
    %c0_i32 = arith.constant 0 : i32
    %c0_i32_0 = arith.constant 0 : i32
    %c0_i32_1 = arith.constant 0 : i32
    %c0_i32_2 = arith.constant 0 : i32
    return %arg0, %c0_i32, %c0_i32_0, %c0_i32_1 : i32, i32, i32, i32
  }
  func.func @transform_1(%arg0: i32) -> (i32, i32, i32, i32) {
    %c0_i32 = arith.constant 0 : i32
    %c0_i32_0 = arith.constant 0 : i32
    %c0_i32_1 = arith.constant 0 : i32
    %c0_i32_2 = arith.constant 0 : i32
    return %arg0, %c0_i32, %c0_i32_0, %c0_i32_1 : i32, i32, i32, i32
  }
  func.func @transform_2(%arg0: i32) -> (i32, i32, i32, i32) {
    %c0_i32 = arith.constant 0 : i32
    %c0_i32_0 = arith.constant 0 : i32
    %c0_i32_1 = arith.constant 0 : i32
    %c0_i32_2 = arith.constant 0 : i32
    return %arg0, %c0_i32, %c0_i32_0, %c0_i32_1 : i32, i32, i32, i32
  }
  func.func @transform_3(%arg0: i32) -> (i32, i32, i32) {
    %c0_i32 = arith.constant 0 : i32
    %c0_i32_0 = arith.constant 0 : i32
    %c0_i32_1 = arith.constant 0 : i32
    return %arg0, %c0_i32, %c0_i32_0 : i32, i32, i32
  }
  func.func @transform_4(%arg0: i32) -> (i32, i32, i32, i32) {
    %c0_i32 = arith.constant 0 : i32
    %c0_i32_0 = arith.constant 0 : i32
    %c0_i32_1 = arith.constant 0 : i32
    %c0_i32_2 = arith.constant 0 : i32
    return %arg0, %c0_i32, %c0_i32_0, %c0_i32_1 : i32, i32, i32, i32
  }
}

</mosaic_0001>

<bundles_post_ra>
// kernel: tpu_custom_call.1
= control target key start
LH: loop header
LB: loop body
LE: loop exit
PB: predicated region body
PF: predicated region fallthrough
CT: control target
= control target key end

     0   :  { %s1529_s0 = inlined_call_operand.hbm [shape: f32[2,2,16,32], index: 0, kind: input, shape index: {}]   ;;  %s1530_s1 = inlined_call_operand.hbm [shape: f32[2,2,16,32], index: 1, kind: input, shape index: {}]   ;;  %s1531_s2 = inlined_call_operand.hbm [shape: f32[2,2,16,32], index: 2, kind: input, shape index: {}]   ;;  %s1532_s3 = inlined_call_operand.vmem [shape: f32[2,1,16], index: 3, kind: input, shape index: {}]   ;;  %s1533_s4 = inlined_call_operand.hbm [shape: f32[2,2,16,32], index: 4, kind: output, shape index: {}]  }
   0x1   :  { %1540 = sst [smem:[#allocation12_spill]] %s1529_s0 }
   0x2   :  { %1541 = sst [smem:[#allocation13_spill]] %s1530_s1 }
   0x3   :  { %9 = vsyncpa [#allocation3], 0 }
   0x4   :  { %11 = vsyncpa [#allocation3 + $0x1], 0 }
   0x5   :  { %12 = vsyncpa [#allocation6], 0 }
   0x6   :  { %14 = vsyncpa [#allocation6 + $0x1], 0 }
   0x7   :  { %15 = vsyncpa [#allocation4], 0 }
   0x8   :  { %17 = vsyncpa [#allocation4 + $0x1], 0  ;;  %s1245_s15 = smov 0   ;;  %s1247_s16 = smov 0  }
   0x9   :  { %s1249_s17 = smov 0   ;;  %s1251_s18 = smov 0  }
   0xa LB: > { %s1266_s19 = sadd.s32 4294967295, %s1210_s18   ;;  %s864_s20 = sadd.s32 4294967294, %s1210_s18   ;;  %s1210_s18 = sphi %s1251_s18, %s1561_s18   ;;  %s1206_s17 = sphi %s1249_s17, %s1560_s17   ;;  %s1202_s16 = sphi %s1247_s16, %s1559_s16   ;;  %s1198_s15 = sphi %s1245_s15, %s1558_s15  }
   0xb   : > { %s1270_s21 = sadd.s32 1, %s1210_s18   ;;  %s30_s22 = sadd.s32 1, %s1206_s17 }
   0xc   : > { %s27_s23 = ssub.s32 %s1210_s18, %s1270_s21  ;;  %p37_p0 = scmp.ne.s32.totalorder %s1206_s17, %s1202_s16 }
   0xd   : > { %p28_p1 = scmp.eq.s32.totalorder %s27_s23, 0  ;;  %p38_p2 = scmp.eq.s32.totalorder %s1210_s18, 0 }
   0xe   : > { %p43_p3 = scmp.ne.s32.totalorder %s1202_s16, %s1198_s15  ;;  %p44_p4 = scmp.eq.s32.totalorder %s1266_s19, 0 }
   0xf   : > { %s1282_s24 = scalar_select %p28_p1, %s1206_s17, %s30_s22  }
  0x10   : > { %p39_p5 = por %p38_p2, %p37_p0  ;;  %p1284_p6 = por %p44_p4, %p43_p3 }
  0x11   : > { %p145_p7 = scmp.eq.s32.totalorder %s1266_s19, 1  ;;  %p151_p8 = scmp.eq.s32.totalorder %s864_s20, 1 }
  0x12   : > { %s1542_s25 = scalar_select %p1284_p6, 1, 0 }
  0x13   : > { %p988_p10 = scmp.lt.s32.totalorder %s1210_s18, 2  ;;  %p1291_p11 = por %p145_p7, %p37_p0 }
  0x14   : > { %p1295_p12 = por %p151_p8, %p43_p3  ;;  %s171_s28 = sand.u32 1, %s1206_s17  }
  0x15   : > { %s1543_s26 = scalar_select %p1291_p11, 1, 0 }
  0x16   : > { %s1544_s27 = scalar_select %p1295_p12, 1, 0 }
  0x17   : > { %s1301_s29 = sshll.u32 %s1210_s18, 9  ;;  %s1305_s30 = sshll.u32 %s171_s28, 5 }
  0x18   : > { %p1307_p13 = pnand %p988_p10, %p39_p5  ;;  %s192_s6 = sand.u32 1, %s1210_s18  }
  0x19   : > { %s1546_s1 = sld [smem:[#allocation13_spill]]  ;;  %s196_s10 = scalar_lea.vmem [#allocation5], %s1305_s30 }
  0x1a   : > { %s203_s11 = sshll.u32 %s196_s10, 4  ;;  %s1322_s12 = scalar_lea.sflag [#allocation6], %s192_s6  ;;  %s1319_s11 = int_to_ptr.vmem [resolvable:$true] %s203_s11 }
  0x1b   : > { %p1328_p2 = pneg %p1307_p13 }
  0x1f   : > { %s1316_s9 = scalar_lea.hbm %s1546_s1, %s1301_s29  ;;  %s1055_s23 = scalar_lea.hbm %s1546_s1, 1024 }
  0x20   : > { %s1050_s13 = scalar_lea.hbm %s1316_s9, 512  ;;  %p1056_p5 = scmp.lt.u32.totalorder %s1316_s9, %s1546_s1 }
  0x21   : > { %p1051_p1 = scmp.ne.s32.totalorder %s1316_s9, %s1050_s13  ;;  %p1057_p7 = scmp.lt.u32.totalorder %s1055_s23, %s1050_s13 }
  0x22   : > { %p1059_p10 = scmp.lt.u32.totalorder %s1050_s13, %s1316_s9 }
  0x23   : > { %p1053_p3 = pnand %p1328_p2, %p1051_p1  ;;  %p1058_p8 = por %p1057_p7, %p1056_p5 }
  0x25   : > { %p1054_p4 = pneg %p1053_p3  ;;  %p1060_p9 = por %p1059_p10, %p1058_p8 }
  0x27   : > { %p1061_p0 = pnand %p1060_p9, %p1054_p4 }
  0x29   : > { %1064 = shalt.err (!%p1061_p0)
}
  0x2a   : > { %s1065_s6 = scalar_lea.vmem %s1319_s11, 512  ;;  %s1212_s10 = smov [#allocation5]  }
  0x2b   : > { %p1066_p1 = scmp.ne.s32.totalorder %s1319_s11, %s1065_s6  ;;  %s1070_s20 = sshll.u32 %s1212_s10, 4  ;;  %s1071_s20 = int_to_ptr.vmem [resolvable:$false] %s1070_s20 }
  0x2c   : > { %s1072_s22 = scalar_lea.vmem %s1071_s20, 1024  ;;  %p1073_p11 = scmp.lt.s32.totalorder %s1319_s11, %s1071_s20 }
  0x2d   : > { %p1068_p3 = pnand %p1066_p1, %p1328_p2  ;;  %p1074_p6 = scmp.lt.s32.totalorder %s1072_s22, %s1065_s6 }
  0x2f   : > { %p1069_p12 = pneg %p1068_p3  ;;  %p1075_p5 = por %p1074_p6, %p1073_p11 }
  0x31   : > { %p1076_p7 = pnand %p1075_p5, %p1069_p12 }
  0x33   : > { %1079 = shalt.err (!%p1076_p7)
}
  0x34   : > { %s1536_s13 = smov 128   ;;  %s1538_s23 = smov 8  }
  0x35   : > { %980 = dma.hbm_to_vmem [thread:$0]  (!%p1307_p13), %s1316_s9, 512, %s1319_s11, %s1322_s12, %s1536_s13, %s1536_s13, %s1538_s23  }
  0x36   : > { %p238_p6 = scmp.lt.s32.totalorder %s1210_s18, 3  ;;  %s1548_s0 = sld [smem:[#allocation12_spill]] }
  0x37   : > { %p1549_p9 = scmp.ge.s32.totalorder %s1210_s18, 1  ;;  %s175_s20 = scalar_lea.vmem [#allocation2], %s1305_s30 }
  0x38   : > { %s182_s22 = sshll.u32 %s175_s20, 4  ;;  %s1373_s9 = scalar_lea.sflag [#allocation3], %s171_s28  ;;  %s1369_s22 = int_to_ptr.vmem [resolvable:$true] %s182_s22 }
  0x39   : > { %p1364_p11 = pnand %p1549_p9, %p238_p6 }
  0x3b   : > { %s1550_s10 = scalar_select %p1364_p11, 1, 0 }
  0x3c   : > { %s1360_s6 = scalar_lea.hbm %s1548_s0, %s1301_s29  ;;  %s1085_s13 = scalar_lea.hbm %s1548_s0, 1024 }
  0x3d   : > { %s1080_s11 = scalar_lea.hbm %s1360_s6, 512  ;;  %p1086_p8 = scmp.lt.u32.totalorder %s1360_s6, %s1548_s0 }
  0x3e   : > { %p1081_p12 = scmp.ne.s32.totalorder %s1360_s6, %s1080_s11  ;;  %p1087_p10 = scmp.lt.u32.totalorder %s1085_s13, %s1080_s11 }
  0x3f   : > { %p1089_p3 = scmp.lt.u32.totalorder %s1080_s11, %s1360_s6 }
  0x40   : > { %p1083_p0 = pnand %p1081_p12, %p1328_p2  ;;  %p1088_p1 = por %p1087_p10, %p1086_p8 }
  0x42   : > { %p1084_p4 = pneg %p1083_p0  ;;  %p1090_p5 = por %p1089_p3, %p1088_p1 }
  0x44   : > { %p1091_p7 = pnand %p1090_p5, %p1084_p4 }
  0x46   : > { %1094 = shalt.err (!%p1091_p7)
}
  0x47   : > { %s1095_s28 = scalar_lea.vmem %s1369_s22, 512  ;;  %s1215_s20 = smov [#allocation2]  }
  0x48   : > { %p1096_p6 = scmp.ne.s32.totalorder %s1369_s22, %s1095_s28  ;;  %s1100_s7 = sshll.u32 %s1215_s20, 4  ;;  %s1101_s7 = int_to_ptr.vmem [resolvable:$false] %s1100_s7 }
  0x49   : > { %s1102_s1 = scalar_lea.vmem %s1101_s7, 1024  ;;  %p1103_p0 = scmp.lt.s32.totalorder %s1369_s22, %s1101_s7 }
  0x4a   : > { %p1098_p9 = pnand %p1096_p6, %p1328_p2  ;;  %p1104_p11 = scmp.lt.s32.totalorder %s1102_s1, %s1095_s28 }
  0x4c   : > { %p1099_p12 = pneg %p1098_p9  ;;  %p1105_p8 = por %p1104_p11, %p1103_p0 }
  0x4e   : > { %p1106_p10 = pnand %p1105_p8, %p1099_p12 }
  0x50   : > { %1109 = shalt.err (!%p1106_p10)
}
  0x51   : > { %s1551_s13 = smov 8   ;;  %s1552_s23 = smov 128  }
  0x52   : > { %977 = dma.hbm_to_vmem [thread:$0]  (!%p1307_p13), %s1360_s6, 512, %s1369_s22, %s1373_s9, %s1552_s23, %s1552_s23, %s1551_s13  }
  0x53   : > { %s1404_s20 = scalar_lea.hbm %s1531_s2, %s1301_s29  ;;  %s217_s28 = scalar_lea.vmem [#allocation7], %s1305_s30 }
  0x54   : > { %s224_s7 = sshll.u32 %s217_s28, 4  ;;  %s1110_s1 = scalar_lea.hbm %s1404_s20, 512  ;;  %s1407_s7 = int_to_ptr.vmem [resolvable:$true] %s224_s7 }
  0x55   : > { %p1111_p11 = scmp.ne.s32.totalorder %s1404_s20, %s1110_s1  ;;  %s1115_s22 = scalar_lea.hbm %s1531_s2, 1024 }
  0x56   : > { %p1116_p3 = scmp.lt.u32.totalorder %s1404_s20, %s1531_s2  ;;  %p1117_p5 = scmp.lt.u32.totalorder %s1115_s22, %s1110_s1 }
  0x57   : > { %p1113_p4 = pnand %p1111_p11, %p1328_p2  ;;  %p1119_p6 = scmp.lt.u32.totalorder %s1110_s1, %s1404_s20 }
  0x58   : > { %p1118_p7 = por %p1117_p5, %p1116_p3 }
  0x59   : > { %p1114_p1 = pneg %p1113_p4 }
  0x5a   : > { %p1120_p9 = por %p1119_p6, %p1118_p7 }
  0x5c   : > { %p1121_p12 = pnand %p1120_p9, %p1114_p1 }
  0x5e   : > { %1124 = shalt.err (!%p1121_p12)
}
  0x5f   : > { %s1125_s30 = scalar_lea.vmem %s1407_s7, 512  ;;  %s1216_s0 = smov [#allocation7]  }
  0x60   : > { %p1126_p0 = scmp.ne.s32.totalorder %s1407_s7, %s1125_s30  ;;  %s1130_s11 = sshll.u32 %s1216_s0, 4  ;;  %s1131_s11 = int_to_ptr.vmem [resolvable:$false] %s1130_s11 }
  0x61   : > { %s1132_s8 = scalar_lea.vmem %s1131_s11, 1024  ;;  %p1133_p11 = scmp.lt.s32.totalorder %s1407_s7, %s1131_s11 }
  0x62   : > { %p1128_p8 = pnand %p1126_p0, %p1328_p2  ;;  %p1134_p4 = scmp.lt.s32.totalorder %s1132_s8, %s1125_s30 }
  0x64   : > { %p1129_p10 = pneg %p1128_p8  ;;  %p1135_p3 = por %p1134_p4, %p1133_p11 }
  0x66   : > { %p1136_p5 = pnand %p1135_p3, %p1129_p10 }
  0x68   : > { %1139 = shalt.err (!%p1136_p5)
}
  0x69   : > { %983 = dma.hbm_to_vmem [thread:$0]  (!%p1307_p13), %s1404_s20, 512, %s1407_s7, %s1322_s12, %s1552_s23, %s1552_s23, %s1551_s13  }
  0x6a   : > { %p1553_p2 = scmp.ne.s32.totalorder %s1550_s10, 0 }
  0x6b   : > { %s1437_s14 = sand.u32 (!%p1553_p2), 1, %s1202_s16   ;;  %p1554_p1 = scmp.ne.s32.totalorder (!%p1553_p2), %s1542_s25, 0 }
  0x6c   : > { %242 = sbr.rel (%p1553_p2) target bundleno = 768 (0x300), region = 36  ;;  %s1440_s28 = sshll.u32 (!%p1553_p2), %s1437_s14, 5 }
  0x6d   : > { %s245_s5 = scalar_lea.sflag (!%p1553_p2), [#allocation3], %s1437_s14  ;;  %s248_s1 = scalar_lea.vmem (!%p1553_p2), [#allocation2], %s1440_s28 }
  0x73   : > { %1185 = dma.done.wait (%p1554_p1), %s245_s5, 512  }
  0x74   : > { %1187 = vsyncadd (%p1554_p1), %s245_s5, 4294966784  ;;  %s253_s12 = sand.u32 1, %s1266_s19   ;;  %s257_s13 = scalar_lea.vmem [#allocation5], %s1440_s28 }
  0x75   : > { %s254_s10 = scalar_lea.sflag [#allocation6], %s253_s12 }
  0x76   : > { %1189 = dma.done.wait (%p1554_p1), %s254_s10, 1024  }
  0x77   : > { %1191 = vsyncadd (%p1554_p1), %s254_s10, 4294966272  ;;  %vm320_vm0 = vcmask 261120   ;;  %v311_v0 = vld [vmem:[%s257_s13] sm:$0xff]  ;;  %v312_v1 = vld [vmem:[%s257_s13 + $0x8] sm:$0xff]  ;;  %p304_p13 = scmp.lt.s32.totalorder %s1266_s19, 1  ;;  %v497_v10 = vlaneseq  ;;  %vm534_vm2 = vcmask 130048  }
  0x78   : > { %vm947_vm1 = vmpackc.low %vm320_vm0, %vm320_vm0  ;;  %v313_v2 = vld [vmem:[%s257_s13 + $0x10] sm:$0xff]  ;;  %v946_v3 = vpack.c.bf16 %v312_v1, %v311_v0  ;;  %v314_v4 = vld [vmem:[%s257_s13 + $0x18] sm:$0xff]  ;;  %s266_s6 = scalar_lea.vmem [#allocation7], %s1440_s28  ;;  %s303_s22 = scalar_lea.vmem [#allocation8], %s1440_s28 }
  0x79   : > { %v307_v5 = vld [vmem:[%s248_s1] sm:$0xff]  ;;  %v309_v6 = vld [vmem:[%s248_s1 + $0x10] sm:$0xff]  ;;  %v952_v7 = vpack.c.bf16 %v314_v4, %v313_v2  ;;  %v308_v8 = vld [vmem:[%s248_s1 + $0x8] sm:$0xff]  ;;  %s305_s25 = scalar_select %p304_p13, %s1266_s19, 1  ;;  %v498_v11 = vshrl.u32 %v497_v10, 7 }
  0x7a   : > { %922 = vmatprep.mubr.msk.f32.mxu0 %vm320_vm0, %v307_v5  ;;  %929 = vmatprep.mubr.msk.f32.mxu1 %vm320_vm0, %v309_v6  ;;  %v310_v9 = vld [vmem:[%s248_s1 + $0x18] sm:$0xff]  ;;  %v315_v52 = vld [vmem:[%s266_s6] sm:$0xff]  ;;  %v316_v53 = vld [vmem:[%s266_s6 + $0x8] sm:$0xff]  ;;  %s739_s9 = sshll.u32 %s303_s22, 4  ;;  %s901_s29 = sshll.u32 %s1266_s19, 9  ;;  %s1477_s9 = int_to_ptr.vmem [resolvable:$true] %s739_s9 }
  0x7b   : > { %948 = vmatprep.subr.msk.bf16.mxu0 %vm947_vm1, %v946_v3  ;;  %954 = vmatprep.subr.msk.bf16.mxu1 %vm947_vm1, %v952_v7  ;;  %s306_s7 = scalar_lea.vmem %s1532_s3, %s305_s25  ;;  %v499_v14 = vsub.s32 0, %v498_v11  ;;  %v958_v54 = vpack.c.bf16 %v316_v53, %v315_v52  ;;  %v317_v55 = vld [vmem:[%s266_s6 + $0x10] sm:$0xff]  ;;  %v318_v56 = vld [vmem:[%s266_s6 + $0x18] sm:$0xff]  ;;  %s1483_s11 = scalar_lea.hbm %s1533_s4, %s901_s29 }
  0x7c   : > { %951 = vmatpush3.bf16.xpose.msk.msra.mxu0 %vm947_vm1, %v946_v3  ;;  %957 = vmatpush3.bf16.xpose.msk.msra.mxu1 %vm947_vm1, %v952_v7  ;;  %v319_v12 = vld [vmem:[%s306_s7] sm:$0x1]  ;;  %v962_v57 = vpack.c.bf16 %v318_v56, %v317_v55  ;;  %s726_s19 = scalar_lea.sflag [#allocation4], %s1437_s14  ;;  %s1140_s8 = scalar_lea.vmem %s1477_s9, 512 }
  0x7d   : > { %v495_v13 = vmul.f32 0.17677669, %v319_v12  ;;  %959 = vmatprep.subr.bf16.mxu0 %v958_v54  ;;  %p1141_p7 = scmp.ne.s32.totalorder %s1477_s9, %s1140_s8  ;;  %p1555_p6 = scmp.ne.s32.totalorder %s1543_s26, 0 }
  0x7e   : > { %963 = vmatprep.subr.bf16.mxu1 %v962_v57  ;;  %s1217_s28 = smov [#allocation8]  }
  0x7f   : > { %v500_v15 = vrot.slane %v495_v13, %v499_v14  ;;  %p1142_p9 = pnand %p1141_p7, %p1555_p6  ;;  %s1144_s5 = sshll.u32 %s1217_s28, 4  ;;  %s1145_s5 = int_to_ptr.vmem [resolvable:$false] %s1144_s5 }
  0x80   : > { %s1146_s1 = scalar_lea.vmem %s1145_s5, 1024  ;;  %p1147_p0 = scmp.lt.s32.totalorder %s1477_s9, %s1145_s5 }
  0x81   : > { %p1143_p12 = pneg %p1142_p9  ;;  %p1148_p8 = scmp.lt.s32.totalorder %s1146_s1, %s1140_s8 }
  0x83   : > { %923 = vmatmul.mubr.msk.f32.vlgmr.msra.gmra.mrb[0].mxu0 %vm320_vm0, %v308_v8  ;;  %930 = vmatmul.mubr.msk.f32.vlgmr.msra.gmra.mrb[0].mxu1 %vm320_vm0, %v310_v9  ;;  %p1149_p10 = por %p1148_p8, %p1147_p0 }
  0x84   : > { %961 = vmatpush3.bf16.msra.mxu0 %v958_v54  ;;  %965 = vmatpush3.bf16.msra.mxu1 %v962_v57 }
  0x85   : > { %p1150_p11 = pnand %p1149_p10, %p1143_p12 }
 0x156   : > { %v924_v16 = vpop.f32.mrb[0].mxu0  ;;  %v931_v18 = vpop.f32.mrb[0].mxu1 }
 0x157   : > { %v503_v17 = vmul.f32 %v924_v16, %v500_v15  ;;  %v399_v19 = vpop.f32.mrb[1].mxu0  ;;  %v505_v20 = vmul.f32 %v931_v18, %v500_v15  ;;  %v486_v22 = vpop.f32.mrb[1].mxu1 }
 0x158   : > { %v502_v21 = vmul.f32 %v500_v15, %v399_v19  ;;  %v504_v24 = vmul.f32 %v500_v15, %v486_v22 }
 0x159   : > { %v507_v23 = vmax.f32 %v503_v17, 0.0  ;;  %v509_v25 = vmax.f32 %v505_v20, 0.0 }
 0x15a   : > { %v506_v26 = vmax.f32 %v502_v21, 0.0  ;;  %v508_v28 = vmax.f32 %v504_v24, 0.0 }
 0x15b   : > { %v512_v27 = vmul.f32 1.442695, %v507_v23  ;;  %v516_v29 = vmul.f32 1.442695, %v509_v25 }
 0x15c   : > { %v510_v30 = vmul.f32 1.442695, %v506_v26  ;;  %v514_v31 = vmul.f32 1.442695, %v508_v28 }
 0x15d   : > { %1026 = vpow2.f32 %v512_v27 }
 0x15e   : > { %1028 = vpow2.f32 %v516_v29 }
 0x15f   : > { %1030 = vpow2.f32 %v510_v30 }
 0x160   : > { %1032 = vpow2.f32 %v514_v31 }
 0x167   : > { %v1027_v32 = vpop.eup %1026 }
 0x168   : > { %v1029_v33 = vpop.eup %1028  ;;  %1034 = vrcp.f32 %v1027_v32 }
 0x169   : > { %v1031_v34 = vpop.eup %1030  ;;  %1036 = vrcp.f32 %v1029_v33 }
 0x16a   : > { %v1033_v35 = vpop.eup %1032  ;;  %1038 = vrcp.f32 %v1031_v34 }
 0x16b   : > { %1040 = vrcp.f32 %v1033_v35 }
 0x172   : > { %v1035_v36 = vpop.eup %1034 }
 0x173   : > { %v1037_v37 = vpop.eup %1036  ;;  %v527_v38 = vsub.f32 %v1027_v32, %v1035_v36 }
 0x174   : > { %v1039_v39 = vpop.eup %1038  ;;  %v529_v40 = vsub.f32 %v1029_v33, %v1037_v37 }
 0x175   : > { %v1041_v41 = vpop.eup %1040  ;;  %v531_v42 = vmul.f32 0.5, %v527_v38  ;;  %v526_v43 = vsub.f32 %v1031_v34, %v1039_v39 }
 0x176   : > { %v528_v44 = vsub.f32 %v1033_v35, %v1041_v41  ;;  %v533_v47 = vmul.f32 0.5, %v529_v40 }
 0x177   : > { %v538_v45 = vsel %vm534_vm2, %v531_v42, 0.0  ;;  %v530_v46 = vmul.f32 0.5, %v526_v43 }
 0x178   : > { %539 = vadd.xlane.f32.xlu1 %v538_v45  ;;  %v532_v49 = vmul.f32 0.5, %v528_v44  ;;  %v544_v50 = vsel %vm534_vm2, %v533_v47, 0.0 }
 0x179   : > { %v535_v48 = vsel %vm534_vm2, %v530_v46, 0.0 }
 0x17a   : > { %536 = vadd.xlane.f32.xlu0 %v535_v48  ;;  %v541_v51 = vsel %vm534_vm2, %v532_v49, 0.0 }
 0x17c   : > { %545 = vadd.xlane.f32.xlu1 %v544_v50 }
 0x17e   : > { %542 = vadd.xlane.f32.xlu0 %v541_v51 }
 0x205   : > { %v540_v58 = vpop.xlane.xlu1 %539 }
 0x206   : > { %v548_v59 = vmax.f32 %v540_v58, 1e-06 }
 0x207   : > { %v537_v60 = vpop.xlane.xlu0 %536 }
 0x208   : > { %v547_v61 = vmax.f32 %v537_v60, 1e-06  ;;  %1042 = vrcp.f32 %v548_v59 }
 0x209   : > { %v546_v62 = vpop.xlane.xlu1 %545 }
 0x20a   : > { %1044 = vrcp.f32 %v547_v61  ;;  %v550_v63 = vmax.f32 %v546_v62, 1e-06 }
 0x20b   : > { %v543_v0 = vpop.xlane.xlu0 %542 }
 0x20c   : > { %v549_v1 = vmax.f32 %v543_v0, 1e-06  ;;  %1046 = vrcp.f32 %v550_v63 }
 0x20e   : > { %1048 = vrcp.f32 %v549_v1 }
 0x212   : > { %v1043_v2 = vpop.eup %1042 }
 0x213   : > { %v554_v5 = vmul.f32 %v1043_v2, %v531_v42 }
 0x214   : > { %v1045_v3 = vpop.eup %1044 }
 0x215   : > { %v552_v4 = vmul.f32 %v1045_v3, %v530_v46 }
 0x216   : > { %v1047_v6 = vpop.eup %1046 }
 0x217   : > { %936 = vmatprep.mubr.msk.f32.mxu0 %vm534_vm2, %v552_v4  ;;  %v558_v9 = vmul.f32 %v1047_v6, %v533_v47 }
 0x218   : > { %v1049_v7 = vpop.eup %1048  ;;  %937 = vmatmul.mubr.msk.f32.vlgmr.msra.gmra.mrb[2].mxu0 %vm534_vm2, %v554_v5 }
 0x219   : > { %v556_v8 = vmul.f32 %v1049_v7, %v532_v49 }
 0x21b   : > { %943 = vmatprep.mubr.msk.f32.mxu1 %vm534_vm2, %v556_v8 }
 0x21c   : > { %944 = vmatmul.mubr.msk.f32.vlgmr.msra.gmra.mrb[2].mxu1 %vm534_vm2, %v558_v9 }
 0x2eb   : > { %v938_v10 = vpop.f32.mrb[2].mxu0 }
 0x2ec   : > { %722 = vst.msk [vmem:[%s303_s22 + $0x8] sm:$0xff] %vm320_vm0, %v938_v10  ;;  %v631_v11 = vpop.f32.mrb[3].mxu0 }
 0x2ed   : > { %721 = vst.msk [vmem:[%s303_s22] sm:$0xff] %vm320_vm0, %v631_v11 }
 0x2ef   : > { %v945_v12 = vpop.f32.mrb[2].mxu1 }
 0x2f0   : > { %724 = vst.msk [vmem:[%s303_s22 + $0x18] sm:$0xff] %vm320_vm0, %v945_v12  ;;  %v712_v13 = vpop.f32.mrb[3].mxu1 }
 0x2f1   : > { %723 = vst.msk [vmem:[%s303_s22 + $0x10] sm:$0xff] %vm320_vm0, %v712_v13 }
 0x2f2   : > { %1153 = shalt.err (!%p1150_p11)
}
 0x2f3   : > { %s1154_s12 = scalar_lea.hbm %s1483_s11, 512  ;;  %s1158_s25 = scalar_lea.hbm %s1533_s4, 1024 }
 0x2f4   : > { %p1155_p4 = scmp.ne.s32.totalorder %s1483_s11, %s1154_s12  ;;  %p1159_p2 = scmp.lt.u32.totalorder %s1483_s11, %s1533_s4 }
 0x2f5   : > { %p1160_p1 = scmp.lt.u32.totalorder %s1158_s25, %s1154_s12  ;;  %p1162_p7 = scmp.lt.u32.totalorder %s1154_s12, %s1483_s11 }
 0x2f6   : > { %p1156_p3 = pnand %p1155_p4, %p1555_p6 }
 0x2f7   : > { %p1161_p13 = por %p1160_p1, %p1159_p2 }
 0x2f8   : > { %p1157_p5 = pneg %p1156_p3 }
 0x2f9   : > { %p1163_p9 = por %p1162_p7, %p1161_p13 }
 0x2fb   : > { %p1164_p12 = pnand %p1163_p9, %p1157_p5 }
 0x2fd   : > { %1167 = shalt.err (!%p1164_p12)
}
 0x2fe   : > { %s1218_s7 = smov 128   ;;  %s1219_s6 = smov 8  }
 0x2ff   : > { %972 = dma.vmem_to_hbm [thread:$0]  (%p1555_p6), %s1477_s9, 512, %s1483_s11, %s726_s19, %s1218_s7, %s1218_s7, %s1219_s6  }
 0x300 PF: > { %s754_s22 = sand.u32 1, %s1198_s15   ;;  %p1556_p0 = scmp.ne.s32.totalorder %s1544_s27, 0 }
 0x301   : > { %p1557_p8 = scmp.ge.s32.totalorder %s1210_s18, 2  ;;  %s755_s29 = scalar_lea.sflag [#allocation4], %s754_s22 }
 0x303   : > { %p985_p10 = pnand %p1557_p8, %p1556_p0 }
 0x305   : > { %1193 = dma.done.wait (!%p985_p10), %s755_s29, 512  }
 0x306   : > { %1195 = vsyncadd (!%p985_p10), %s755_s29, 4294966784  ;;  %p20_p11 = scmp.ge.s32.totalorder %s1270_s21, 4   ;;  %s1558_s15 = smov %s1202_s16 }
 0x307   : > { %s1559_s16 = smov %s1206_s17  ;;  %s1560_s17 = smov %s1282_s24 }
 0x308   : > { %s1561_s18 = smov %s1270_s21  ;;  %22 = sbr.rel (!%p20_p11) target bundleno = 10 (0xa), region = 108 }
 0x30f   :  { %760 = vsyncpa [#allocation3], 1 }
 0x310   :  { %762 = vsyncpa [#allocation3 + $0x1], 1 }
 0x311   :  { %763 = vsyncpa [#allocation6], 1 }
 0x312   :  { %765 = vsyncpa [#allocation6 + $0x1], 1 }
 0x313   :  { %766 = vsyncpa [#allocation4], 1 }
 0x314   :  { %768 = vsyncpa [#allocation4 + $0x1], 1 }

</bundles_post_ra>
